<compile_context>
chip_gen: v7x
topology: tpu7x:2x2x1
jax: 0.10.0
libtpu: 0.0.40
codegen_flags: <defaults>
</compile_context>

<pallas_src>
import jax
import jax.numpy as jnp
from jax.experimental import pallas as pl
from jax.experimental.pallas import tpu as pltpu

_PALLAS_MIN_ELEMS = 1 << 20        # below this, fused XLA elementwise wins
_VMEM_LIMIT_CAP = 48 * 1024 * 1024  # stay well under v7x's 64 MiB/TC physical


def _softplus_kernel(x_ref, y_ref, z_ref):
    x = x_ref[...].astype(jnp.float32)
    # Numerically stable shared form:
    #   softplus(x)  = max(x, 0)  + log1p(exp(-|x|))
    #   softplus(-x) = max(-x, 0) + log1p(exp(-|x|))
    # -> one exp + one log1p per element on the EUP; everything else VPU.
    t = jnp.log1p(jnp.exp(-jnp.abs(x)))
    y = jnp.maximum(x, 0.0) + t
    # z = -log(-expm1(-softplus(x))) == softplus(-x).  For x <~ -88 the literal
    # PyTorch chain overflows to +inf; this form returns the finite,
    # mathematically correct value (~ -x).  Identical within tolerance
    # everywhere else.
    z = jnp.maximum(-x, 0.0) + t
    y_ref[...] = y.astype(y_ref.dtype)
    z_ref[...] = z.astype(z_ref.dtype)


def _softplus_pair_jnp(x):
    """Plain-jnp path (small inputs / ragged tail). Same math as the kernel."""
    xf = x.astype(jnp.float32)
    t = jnp.log1p(jnp.exp(-jnp.abs(xf)))
    y = jnp.maximum(xf, 0.0) + t
    z = jnp.maximum(-xf, 0.0) + t
    return y.astype(x.dtype), z.astype(x.dtype)


def _choose_lanes(n):
    """Widest lane count that divides n exactly (no padding needed).

    The (8,128)/(16,128) tiling constraint is on the BlockSpec block shape,
    not on the array, so the row count does NOT need to be a multiple of the
    sublane count -- Pallas masks the partial trailing row-block.
    """
    for lanes in (1024, 512, 256, 128):
        if n % lanes == 0:
            return lanes
    return None


def _target_block_elems():
    """Generation-aware block size (elements per VMEM buffer)."""
    try:
        kind = jax.devices()[0].device_kind.lower()
    except Exception:  # pragma: no cover - defensive; default is safe anywhere
        kind = ""
    if "v5" in kind and ("lite" in kind or "5e" in kind):
        return 512 * 1024   # ~2 MiB f32/buffer: per-step overhead already <5%
    return 1024 * 1024       # ~4 MiB f32/buffer on v6e / v7x and newer


def _run_pallas_slab(x2d, sub):
    """Run the kernel over a lane-dense (rows, lanes) slab."""
    rows, lanes = x2d.shape
    itemsize = jnp.dtype(x2d.dtype).itemsize

    if rows >= 2 * sub:
        max_block_rows = max(sub, (_target_block_elems() // lanes) // sub * sub)
        # At least 2 balanced grid steps so dimension_semantics=("parallel",)
        # can shard work across both v7x TensorCores.
        two_step_rows = pl.cdiv(pl.cdiv(rows, 2), sub) * sub
        block_rows = min(max_block_rows, two_step_rows)
    else:
        # Tiny slab: a single full-extent block (allowed: equals the array dim).
        block_rows = rows

    grid = (pl.cdiv(rows, block_rows),)
    blk = pl.BlockSpec((block_rows, lanes), lambda i: (i, 0))

    # VMEM budget: 1 input + 2 outputs, each double-buffered, + headroom.
    block_bytes = block_rows * lanes * itemsize
    vmem_limit = max(16 * 1024 * 1024,
                     min(6 * block_bytes + 4 * 1024 * 1024, _VMEM_LIMIT_CAP))

    return pl.pallas_call(
        _softplus_kernel,
        grid=grid,
        in_specs=[blk],
        out_specs=(blk, blk),
        out_shape=(
            jax.ShapeDtypeStruct((rows, lanes), x2d.dtype),
            jax.ShapeDtypeStruct((rows, lanes), x2d.dtype),
        ),
        compiler_params=pltpu.CompilerParams(
            dimension_semantics=("parallel",),
            vmem_limit_bytes=int(vmem_limit),
        ),
    )(x2d)


def softplus_layer(x, *, force_pallas=False):
    """Pallas implementation of SoftplusLayer.forward. Returns (y, z)."""
    orig_shape = x.shape
    orig_dtype = x.dtype
    n = x.size

    if n == 0:
        empty = jnp.zeros(orig_shape, orig_dtype)
        return empty, empty

    # Small-input fallback: pallas_call launch / pipeline setup is us-scale
    # fixed cost; fused XLA elementwise is strictly faster for tiny tensors.
    if not force_pallas and n < _PALLAS_MIN_ELEMS:
        return _softplus_pair_jnp(x)

    itemsize = jnp.dtype(orig_dtype).itemsize
    # Minimum sublane multiple for the block: 8 for 4-byte dtypes, 16 for bf16.
    sub = max(8, 32 // max(itemsize, 1))

    flat = jnp.ravel(x)
    lanes = _choose_lanes(n)

    if lanes is not None:
        # No padding, no slicing: the whole array streams through the kernel.
        y2d, z2d = _run_pallas_slab(flat.reshape(n // lanes, lanes), sub)
        return (y2d.reshape(orig_shape), z2d.reshape(orig_shape))

    # Ragged size (n % 128 != 0): kernel handles the 1024-divisible prefix,
    # plain jnp handles the < 1024-element tail.  Avoids padding the input and
    # slicing both outputs over the full array.
    lanes = 1024
    n_main = (n // lanes) * lanes
    if n_main == 0:
        return _softplus_pair_jnp(x)

    main = flat[:n_main]
    tail = flat[n_main:]
    y2d, z2d = _run_pallas_slab(main.reshape(n_main // lanes, lanes), sub)
    y_tail, z_tail = _softplus_pair_jnp(tail)
    y = jnp.concatenate([y2d.reshape(-1), y_tail]).reshape(orig_shape)
    z = jnp.concatenate([z2d.reshape(-1), z_tail]).reshape(orig_shape)
    return y, z


def _torch_reference(x):
    """PyTorch nn.Softplus semantics (beta=1, threshold=20) + the z chain."""
    thr = 20.0
    y = jnp.where(x > thr, x, jnp.log1p(jnp.exp(jnp.minimum(x, thr))))
    z = -jnp.log(-jnp.expm1(-y))
    return y, z


if __name__ == "__main__":
    key = jax.random.PRNGKey(0)

    # 1) Small NCHW-like tensor (SoftplusLayer is shape-agnostic / elementwise);
    #    force the Pallas path so the kernel itself is exercised.
    x = jax.random.normal(key, (2, 4, 16, 16), dtype=jnp.float32) * 3.0
    y, z = softplus_layer(x, force_pallas=True)
    jax.block_until_ready((y, z))
    y_ref, z_ref = _torch_reference(x)
    assert y.shape == x.shape and z.shape == x.shape
    assert jnp.allclose(y, y_ref, atol=1e-5, rtol=1e-5)
    assert jnp.allclose(z, z_ref, atol=1e-5, rtol=1e-5)

    # 2) Multi-block path (multiple grid steps, >= 2 for megacore sharding).
    x1 = jax.random.normal(jax.random.PRNGKey(1), (8, 256, 128), dtype=jnp.float32) * 3.0
    y1, z1 = softplus_layer(x1, force_pallas=True)
    jax.block_until_ready((y1, z1))
    y1_ref, z1_ref = _torch_reference(x1)
    assert jnp.allclose(y1, y1_ref, atol=1e-5, rtol=1e-5)
    assert jnp.allclose(z1, z1_ref, atol=1e-5, rtol=1e-5)

    # 3) Ragged size (not a multiple of 128): Pallas prefix + jnp tail.
    x2 = jax.random.normal(jax.random.PRNGKey(2), (3, 5, 77), dtype=jnp.float32) * 3.0
    y2, z2 = softplus_layer(x2, force_pallas=True)
    jax.block_until_ready((y2, z2))
    y2_ref, z2_ref = _torch_reference(x2)
    assert y2.shape == x2.shape and z2.shape == x2.shape
    assert jnp.allclose(y2, y2_ref, atol=1e-5, rtol=1e-5)
    assert jnp.allclose(z2, z2_ref, atol=1e-5, rtol=1e-5)

    # 4) Default small-input fallback path (plain jnp).
    x3 = jax.random.normal(jax.random.PRNGKey(3), (3, 5, 7), dtype=jnp.float32) * 3.0
    y3, z3 = softplus_layer(x3)
    jax.block_until_ready((y3, z3))
    y3_ref, z3_ref = _torch_reference(x3)
    assert jnp.allclose(y3, y3_ref, atol=1e-5, rtol=1e-5)
    assert jnp.allclose(z3, z3_ref, atol=1e-5, rtol=1e-5)

    print("KERNEL_OK")
</pallas_src>

<mosaic_0001>
module attributes {stable_mosaic.version = 11 : i64} {
  func.func @_softplus_kernel(%arg0: i32, %arg1: memref<2x1024xf32, #tpu.memory_space<vmem>>, %arg2: memref<2x1024xf32, #tpu.memory_space<vmem>>, %arg3: memref<2x1024xf32, #tpu.memory_space<vmem>>) attributes {dimension_semantics = [#tpu.dimension_semantics<parallel>], iteration_bounds = array<i64: 1>, scalar_prefetch = 0 : i64, scratch_operands = 0 : i64, tpu.core_type = #tpu.core_type<tc>, window_params = [{transform_indices = @transform_0, window_bounds = array<i64: 2, 1024>}, {transform_indices = @transform_1, window_bounds = array<i64: 2, 1024>}, {transform_indices = @transform_2, window_bounds = array<i64: 2, 1024>}]} {
    %c0 = arith.constant 0 : index
    %c0_0 = arith.constant 0 : index
    %0 = vector.load %arg1[%c0, %c0_0] : memref<2x1024xf32, #tpu.memory_space<vmem>>, vector<2x1024xf32>
    %1 = math.absf %0 : vector<2x1024xf32>
    %cst = arith.constant 0.000000e+00 : f32
    %2 = vector.broadcast %cst : f32 to vector<2x1024xf32>
    %3 = arith.subf %2, %1 : vector<2x1024xf32>
    %4 = math.exp %3 : vector<2x1024xf32>
    %5 = math.log1p %4 : vector<2x1024xf32>
    %cst_1 = arith.constant 0.000000e+00 : f32
    %6 = vector.broadcast %cst_1 : f32 to vector<2x1024xf32>
    %7 = arith.maximumf %0, %6 : vector<2x1024xf32>
    %8 = arith.addf %7, %5 : vector<2x1024xf32>
    %cst_2 = arith.constant 0.000000e+00 : f32
    %9 = vector.broadcast %cst_2 : f32 to vector<2x1024xf32>
    %10 = arith.subf %9, %0 : vector<2x1024xf32>
    %cst_3 = arith.constant 0.000000e+00 : f32
    %11 = vector.broadcast %cst_3 : f32 to vector<2x1024xf32>
    %12 = arith.maximumf %10, %11 : vector<2x1024xf32>
    %13 = arith.addf %12, %5 : vector<2x1024xf32>
    %c0_4 = arith.constant 0 : index
    %c0_5 = arith.constant 0 : index
    %14 = vector.load %arg2[%c0_4, %c0_5] : memref<2x1024xf32, #tpu.memory_space<vmem>>, vector<2x1024xf32>
    tpu.vector_store %arg2[%c0_4, %c0_5], %8 {strides = array<i32>} : memref<2x1024xf32, #tpu.memory_space<vmem>>, vector<2x1024xf32>,
    %c0_6 = arith.constant 0 : index
    %c0_7 = arith.constant 0 : index
    %15 = vector.load %arg3[%c0_6, %c0_7] : memref<2x1024xf32, #tpu.memory_space<vmem>>, vector<2x1024xf32>
    tpu.vector_store %arg3[%c0_6, %c0_7], %13 {strides = array<i32>} : memref<2x1024xf32, #tpu.memory_space<vmem>>, vector<2x1024xf32>,
    return
  }
  func.func @transform_0(%arg0: i32) -> (i32, i32) {
    %c0_i32 = arith.constant 0 : i32
    %c0_i32_0 = arith.constant 0 : i32
    return %arg0, %c0_i32 : i32, i32
  }
  func.func @transform_1(%arg0: i32) -> (i32, i32) {
    %c0_i32 = arith.constant 0 : i32
    %c0_i32_0 = arith.constant 0 : i32
    return %arg0, %c0_i32 : i32, i32
  }
  func.func @transform_2(%arg0: i32) -> (i32, i32) {
    %c0_i32 = arith.constant 0 : i32
    %c0_i32_0 = arith.constant 0 : i32
    return %arg0, %c0_i32 : i32, i32
  }
}

</mosaic_0001>

<bundles_post_ra>
// kernel: tpu_custom_call.1
= control target key start
LH: loop header
LB: loop body
LE: loop exit
PB: predicated region body
PF: predicated region fallthrough
CT: control target
= control target key end

     0   :  { %8 = vsyncpa [#allocation3], 0  ;;  %s232_s0 = inlined_call_operand.hbm [shape: f32[2,1024], index: 0, kind: input, shape index: {}]   ;;  %s233_s1 = inlined_call_operand.hbm [shape: f32[2,1024], index: 1, kind: output, shape index: {0}]   ;;  %s234_s2 = inlined_call_operand.hbm [shape: f32[2,1024], index: 2, kind: output, shape index: {1}]  }
   0x1   :  { %9 = vsyncpa [#allocation4], 0 }
   0x2   :  { %10 = vsyncpa [#allocation7], 0  ;;  %s178_s9 = smov [#allocation2]   ;;  %s106_s13 = scalar_lea.hbm %s232_s0, 256 }
   0x3   :  { %s17_s10 = sshll.u32 %s178_s9, 4  ;;  %p107_p0 = scmp.ne.s32.totalorder %s232_s0, %s106_s13  ;;  %s18_s10 = int_to_ptr.vmem [resolvable:$true] %s17_s10 }
   0x4   :  { %p110_p1 = scmp.lt.u32.totalorder %s106_s13, %s232_s0 }
   0x6   :  { %p112_p2 = pnand %p110_p1, %p107_p0 }
   0x8   :  { %115 = shalt.err (!%p112_p2)
}
   0x9   :  { %s116_s18 = scalar_lea.vmem %s18_s10, 256  ;;  %p121_p4 = scmp.lt.s32.totalorder %s18_s10, %s18_s10 }
   0xa   :  { %p117_p3 = scmp.ne.s32.totalorder %s18_s10, %s116_s18  ;;  %p122_p5 = scmp.lt.s32.totalorder %s116_s18, %s116_s18 }
   0xc   :  { %p123_p6 = por %p122_p5, %p121_p4 }
   0xe   :  { %p124_p7 = pnand %p123_p6, %p117_p3 }
  0x10   :  { %127 = shalt.err (!%p124_p7)
}
  0x11   :  { %20 = dma.hbm_to_vmem [thread:$0]  %s232_s0, 256, %s18_s10, [#allocation3]  }
  0x12   :  { %172 = dma.done.wait [#allocation3], 256  }
  0x13   :  { %173 = vsyncadd [#allocation3], 4294967040  ;;  %v24_v0 = vld [vmem:[#allocation2] sm:$0xff]  ;;  %v25_v1 = vld [vmem:[#allocation2 + $0x8] sm:$0xff]  ;;  %s179_s0 = smov [#allocation5]   ;;  %s180_s22 = smov [#allocation6]  }
  0x14   :  { %v26_v2 = vand.u32 2147483647, %v24_v0  ;;  %v27_v3 = vand.u32 2147483647, %v25_v1  ;;  %v56_v17 = vsub.f32 0.0, %v24_v0  ;;  %v57_v19 = vsub.f32 0.0, %v25_v1 }
  0x15   :  { %v52_v22 = vmax.f32 %v24_v0, 0.0  ;;  %v53_v27 = vmax.f32 %v25_v1, 0.0  ;;  %s72_s21 = sshll.u32 %s179_s0, 4  ;;  %s82_s23 = sshll.u32 %s180_s22, 4  ;;  %s73_s21 = int_to_ptr.vmem [resolvable:$true] %s72_s21  ;;  %s83_s23 = int_to_ptr.vmem [resolvable:$true] %s82_s23 }
  0x16   :  { %v28_v4 = vsub.f32 0.0, %v26_v2  ;;  %v29_v5 = vsub.f32 0.0, %v27_v3  ;;  %v58_v24 = vmax.f32 %v56_v17, 0.0  ;;  %v59_v28 = vmax.f32 %v57_v19, 0.0  ;;  %s128_s24 = scalar_lea.vmem %s73_s21, 256  ;;  %p133_p9 = scmp.lt.s32.totalorder %s73_s21, %s73_s21 }
  0x17   :  { %p129_p8 = scmp.ne.s32.totalorder %s73_s21, %s128_s24  ;;  %p134_p10 = scmp.lt.s32.totalorder %s128_s24, %s128_s24 }
  0x18   :  { %v30_v6 = vmul.f32 1.442695, %v28_v4  ;;  %v32_v7 = vmul.f32 1.442695, %v29_v5 }
  0x19   :  { %p135_p11 = por %p134_p10, %p133_p9 }
  0x1a   :  { %98 = vpow2.f32 %v30_v6 }
  0x1b   :  { %100 = vpow2.f32 %v32_v7  ;;  %p136_p12 = pnand %p135_p11, %p129_p8 }
  0x24   :  { %v99_v8 = vpop.eup %98 }
  0x25   :  { %v101_v9 = vpop.eup %100  ;;  %v34_v10 = vadd.f32 1.0, %v99_v8  ;;  %v37_v12 = vmul.f32 -0.5, %v99_v8  ;;  %v40_v15 = vand.u32 2147483647, %v99_v8 }
  0x26   :  { %v43_v11 = vadd.f32 1.0, %v101_v9  ;;  %v46_v13 = vmul.f32 -0.5, %v101_v9  ;;  %v49_v18 = vand.u32 2147483647, %v101_v9 }
  0x27   :  { %102 = vlog2.f32 %v34_v10  ;;  %v38_v14 = vadd.f32 1.0, %v37_v12  ;;  %vm41_vm0 = vcmp.lt.f32.partialorder %v40_v15, 0.0004427343 }
  0x28   :  { %104 = vlog2.f32 %v43_v11  ;;  %v47_v16 = vadd.f32 1.0, %v46_v13  ;;  %vm50_vm1 = vcmp.lt.f32.partialorder %v49_v18, 0.0004427343 }
  0x29   :  { %v39_v20 = vmul.f32 %v99_v8, %v38_v14 }
  0x2a   :  { %v48_v23 = vmul.f32 %v101_v9, %v47_v16 }
  0x31   :  { %v103_v21 = vpop.eup %102 }
  0x32   :  { %v105_v25 = vpop.eup %104  ;;  %v36_v26 = vmul.f32 0.6931472, %v103_v21 }
  0x33   :  { %v45_v29 = vmul.f32 0.6931472, %v105_v25 }
  0x34   :  { %v42_v30 = vsel %vm41_vm0, %v39_v20, %v36_v26 }
  0x35   :  { %v54_v31 = vadd.f32 %v52_v22, %v42_v30  ;;  %v51_v32 = vsel %vm50_vm1, %v48_v23, %v45_v29  ;;  %v60_v33 = vadd.f32 %v58_v24, %v42_v30 }
  0x36   :  { %v55_v34 = vadd.f32 %v53_v27, %v51_v32  ;;  %v61_v35 = vadd.f32 %v59_v28, %v51_v32 }
  0x37   :  { %62 = vst [vmem:[#allocation5] sm:$0xff] %v54_v31  ;;  %64 = vst [vmem:[#allocation6] sm:$0xff] %v60_v33 }
  0x38   :  { %63 = vst [vmem:[#allocation5 + $0x8] sm:$0xff] %v55_v34  ;;  %65 = vst [vmem:[#allocation6 + $0x8] sm:$0xff] %v61_v35 }
  0x39   :  { %139 = shalt.err (!%p136_p12)
}
  0x3a   :  { %s140_s27 = scalar_lea.hbm %s233_s1, 256 }
  0x3b   :  { %p141_p13 = scmp.ne.s32.totalorder %s233_s1, %s140_s27  ;;  %p144_p0 = scmp.lt.u32.totalorder %s140_s27, %s233_s1 }
  0x3d   :  { %p146_p1 = pnand %p144_p0, %p141_p13 }
  0x3f   :  { %149 = shalt.err (!%p146_p1)
}
  0x40   :  { %75 = dma.vmem_to_hbm [thread:$0]  %s73_s21, 256, %s233_s1, [#allocation4]  }
  0x41   :  { %s150_s6 = scalar_lea.vmem %s83_s23, 256  ;;  %p155_p3 = scmp.lt.s32.totalorder %s83_s23, %s83_s23 }
  0x42   :  { %p151_p2 = scmp.ne.s32.totalorder %s83_s23, %s150_s6  ;;  %p156_p4 = scmp.lt.s32.totalorder %s150_s6, %s150_s6 }
  0x44   :  { %p157_p5 = por %p156_p4, %p155_p3 }
  0x46   :  { %p158_p6 = pnand %p157_p5, %p151_p2 }
  0x48   :  { %161 = shalt.err (!%p158_p6)
}
  0x49   :  { %s162_s9 = scalar_lea.hbm %s234_s2, 256 }
  0x4a   :  { %p163_p7 = scmp.ne.s32.totalorder %s234_s2, %s162_s9  ;;  %p166_p8 = scmp.lt.u32.totalorder %s162_s9, %s234_s2 }
  0x4c   :  { %p168_p9 = pnand %p166_p8, %p163_p7 }
  0x4e   :  { %171 = shalt.err (!%p168_p9)
}
  0x4f   :  { %85 = dma.vmem_to_hbm [thread:$0]  %s83_s23, 256, %s234_s2, [#allocation7]  }
  0x50   :  { %174 = dma.done.wait [#allocation4], 256  }
  0x51   :  { %175 = vsyncadd [#allocation4], 4294967040 }
  0x52   :  { %176 = dma.done.wait [#allocation7], 256  }
  0x53   :  { %177 = vsyncadd [#allocation7], 4294967040 }
  0x54   :  { %92 = vsyncpa [#allocation3], 1 }
  0x55   :  { %93 = vsyncpa [#allocation4], 1 }
  0x56   :  { %94 = vsyncpa [#allocation7], 1 }

</bundles_post_ra>
